<compile_context>
chip_gen: v5e
topology: v5e:2x2
jax: 0.10.0
libtpu: 0.0.40
codegen_flags: <defaults>
</compile_context>

<pallas_src>
import jax
import jax.numpy as jnp
from jax.experimental import pallas as pl
from jax.experimental.pallas import tpu as pltpu


def mlp_kernel(x_ref, w1_ref, b1_ref, w2_ref, b2_ref, o_ref):
    # Cast activations to bf16 in-kernel (free under DMA); accumulate in f32.
    x = x_ref[...].astype(w1_ref.dtype)                       # (TB, C) bf16
    # Layer 1: (TB, C) @ (C, H) -> (TB, H), bias (1, H) broadcasts over rows.
    h = jnp.dot(x, w1_ref[...], preferred_element_type=jnp.float32)
    h = jnp.maximum(h + b1_ref[...], 0.0)
    # Layer 2: (TB, H) @ (H, C) -> (TB, C).
    y = jnp.dot(h.astype(w2_ref.dtype), w2_ref[...],
                preferred_element_type=jnp.float32)
    y = y + b2_ref[...]
    # sigmoid(y) = 0.5 * (tanh(0.5 * y) + 1): one EUP op/elem, overflow-safe.
    o_ref[...] = (0.5 * (jnp.tanh(0.5 * y) + 1.0)).astype(o_ref.dtype)


def mlp_forward(eta, w1, b1, w2, b2, *, tb=8192, compute_dtype=jnp.bfloat16,
                out_dtype=None):
    """eta: (B, C).  w1: (H, C), b1: (H,), w2: (C, H), b2: (C,) in PyTorch
    nn.Linear (out_features, in_features) layout.  Returns (B, C)."""
    B, C = eta.shape
    H, C1 = w1.shape
    assert C1 == C and w2.shape == (C, H) and b1.shape == (H,) and b2.shape == (C,)
    assert tb % 128 == 0
    out_dtype = eta.dtype if out_dtype is None else out_dtype

    # ---- Batch tiling ------------------------------------------------------
    # Large lane-/sublane-friendly tiles amortize per-step overhead; keep the
    # ~0.4 KB * TB per-step working set inside the default scoped VMEM budget
    # (v7x is the binding generation).  Guarantee >= 2 grid steps when B > 128
    # so v7x's dual TensorCores are both used on the "parallel" axis.
    if B <= 128:
        TB, B_pad = B, B                       # single full-array block, no pad
    else:
        TB = min(tb, pl.cdiv(B, 128) * 128)
        if pl.cdiv(B, TB) < 2:
            TB = pl.cdiv(pl.cdiv(B, 2), 128) * 128
        B_pad = pl.cdiv(B, TB) * TB

    x = eta if B_pad == B else jnp.pad(eta, ((0, B_pad - B), (0, 0)))

    # Weights/biases are tiny, stay resident in VMEM; pre-transpose to math
    # layout and pre-cast once in the wrapper (negligible one-off cost).
    w1t = w1.T.astype(compute_dtype)                 # (C, H)
    w2t = w2.T.astype(compute_dtype)                 # (H, C)
    b1r = b1.reshape(1, H).astype(jnp.float32)
    b2r = b2.reshape(1, C).astype(jnp.float32)

    grid = (B_pad // TB,)
    in_bytes = jnp.dtype(eta.dtype).itemsize
    out_bytes = jnp.dtype(out_dtype).itemsize
    cost = pl.CostEstimate(
        flops=4 * B_pad * C * H,
        transcendentals=B_pad * C,
        bytes_accessed=B_pad * C * (in_bytes + out_bytes) + 4 * C * H + 2 * (C + H),
    )

    y = pl.pallas_call(
        mlp_kernel,
        out_shape=jax.ShapeDtypeStruct((B_pad, C), out_dtype),
        grid_spec=pltpu.PrefetchScalarGridSpec(
            num_scalar_prefetch=0,
            grid=grid,
            in_specs=[
                pl.BlockSpec((TB, C), lambda i: (i, 0)),   # activations (tiled)
                pl.BlockSpec((C, H), lambda i: (0, 0)),    # resident weights
                pl.BlockSpec((1, H), lambda i: (0, 0)),
                pl.BlockSpec((H, C), lambda i: (0, 0)),
                pl.BlockSpec((1, C), lambda i: (0, 0)),
            ],
            out_specs=pl.BlockSpec((TB, C), lambda i: (i, 0)),
        ),
        compiler_params=pltpu.CompilerParams(
            dimension_semantics=("parallel",),   # independent batch tiles
        ),
        cost_estimate=cost,
    )(x, w1t, b1r, w2t, b2r)

    return y if B_pad == B else y[:B]


def reference_forward(eta, w1, b1, w2, b2):
    h = jnp.maximum(eta @ w1.T + b1, 0.0)
    return jax.nn.sigmoid(h @ w2.T + b2)


if __name__ == "__main__":
    num_constraints = 16
    hidden = 32

    key = jax.random.PRNGKey(0)
    k_x, k_w1, k_b1, k_w2, k_b2, k_x2, k_x3 = jax.random.split(key, 7)

    # Deterministic init mimicking nn.Linear's uniform(-1/sqrt(fan_in), ...),
    # stored in PyTorch (out_features, in_features) layout.
    bound1 = 1.0 / jnp.sqrt(num_constraints)
    w1 = jax.random.uniform(k_w1, (hidden, num_constraints),
                            minval=-bound1, maxval=bound1, dtype=jnp.float32)
    b1 = jax.random.uniform(k_b1, (hidden,),
                            minval=-bound1, maxval=bound1, dtype=jnp.float32)
    bound2 = 1.0 / jnp.sqrt(hidden)
    w2 = jax.random.uniform(k_w2, (num_constraints, hidden),
                            minval=-bound2, maxval=bound2, dtype=jnp.float32)
    b2 = jax.random.uniform(k_b2, (num_constraints,),
                            minval=-bound2, maxval=bound2, dtype=jnp.float32)

    # Case 1: small batch (single full-array block, no padding).
    batch = 8
    eta = jax.random.normal(k_x, (batch, num_constraints), dtype=jnp.float32)
    out = jax.block_until_ready(mlp_forward(eta, w1, b1, w2, b2))
    ref = reference_forward(eta, w1, b1, w2, b2)
    assert out.shape == (batch, num_constraints)
    # bf16 MXU inputs -> loosened tolerance vs f32 reference.
    assert jnp.allclose(out, ref, atol=2e-2, rtol=2e-2), \
        float(jnp.max(jnp.abs(out - ref)))

    # Case 2: batch exercising the multi-tile pipeline (grid of 2 batch tiles).
    batch2 = 512
    eta2 = jax.random.normal(k_x2, (batch2, num_constraints), dtype=jnp.float32)
    out2 = jax.block_until_ready(mlp_forward(eta2, w1, b1, w2, b2))
    ref2 = reference_forward(eta2, w1, b1, w2, b2)
    assert out2.shape == (batch2, num_constraints)
    assert jnp.allclose(out2, ref2, atol=2e-2, rtol=2e-2), \
        float(jnp.max(jnp.abs(out2 - ref2)))

    # Case 3: ragged batch exercising the padded path.
    batch3 = 300
    eta3 = jax.random.normal(k_x3, (batch3, num_constraints), dtype=jnp.float32)
    out3 = jax.block_until_ready(mlp_forward(eta3, w1, b1, w2, b2))
    ref3 = reference_forward(eta3, w1, b1, w2, b2)
    assert out3.shape == (batch3, num_constraints)
    assert jnp.allclose(out3, ref3, atol=2e-2, rtol=2e-2), \
        float(jnp.max(jnp.abs(out3 - ref3)))

    print("KERNEL_OK")
</pallas_src>

<mosaic_0001>
module attributes {stable_mosaic.version = 11 : i64} {
  func.func @mlp_kernel(%arg0: i32, %arg1: memref<8x16xf32, #tpu.memory_space<vmem>>, %arg2: memref<16x32xbf16, #tpu.memory_space<vmem>>, %arg3: memref<1x32xf32, #tpu.memory_space<vmem>>, %arg4: memref<32x16xbf16, #tpu.memory_space<vmem>>, %arg5: memref<1x16xf32, #tpu.memory_space<vmem>>, %arg6: memref<8x16xf32, #tpu.memory_space<vmem>>) attributes {dimension_semantics = [#tpu.dimension_semantics<parallel>], iteration_bounds = array<i64: 1>, scalar_prefetch = 0 : i64, scratch_operands = 0 : i64, tpu.core_type = #tpu.core_type<tc>, window_params = [{transform_indices = @transform_0, window_bounds = array<i64: 8, 16>}, {pipeline_mode = #tpu.pipeline_mode<synchronous>, transform_indices = @transform_1, window_bounds = array<i64: 16, 32>}, {pipeline_mode = #tpu.pipeline_mode<synchronous>, transform_indices = @transform_2, window_bounds = array<i64: 1, 32>}, {pipeline_mode = #tpu.pipeline_mode<synchronous>, transform_indices = @transform_3, window_bounds = array<i64: 32, 16>}, {pipeline_mode = #tpu.pipeline_mode<synchronous>, transform_indices = @transform_4, window_bounds = array<i64: 1, 16>}, {transform_indices = @transform_5, window_bounds = array<i64: 8, 16>}]} {
    %c0 = arith.constant 0 : index
    %c0_0 = arith.constant 0 : index
    %0 = vector.load %arg1[%c0, %c0_0] : memref<8x16xf32, #tpu.memory_space<vmem>>, vector<8x16xf32>
    %1 = arith.truncf %0 : vector<8x16xf32> to vector<8x16xbf16>
    %c0_1 = arith.constant 0 : index
    %c0_2 = arith.constant 0 : index
    %2 = vector.load %arg2[%c0_1, %c0_2] : memref<16x32xbf16, #tpu.memory_space<vmem>>, vector<16x32xbf16>
    %cst = arith.constant dense<0.000000e+00> : vector<8x32xf32>
    %3 = tpu.matmul %1, %2, %cst {dimension_numbers = #tpu.dot_dimension_numbers<[1], [0], [0], [1], [0, 0, 1, 1], [], []>} : vector<8x16xbf16>, vector<16x32xbf16>, vector<8x32xf32> -> vector<8x32xf32>
    %c0_3 = arith.constant 0 : index
    %c0_4 = arith.constant 0 : index
    %4 = vector.load %arg3[%c0_3, %c0_4] : memref<1x32xf32, #tpu.memory_space<vmem>>, vector<1x32xf32>
    %5 = vector.broadcast %4 : vector<1x32xf32> to vector<8x32xf32>
    %6 = arith.addf %3, %5 : vector<8x32xf32>
    %cst_5 = arith.constant 0.000000e+00 : f32
    %7 = vector.broadcast %cst_5 : f32 to vector<8x32xf32>
    %8 = arith.maximumf %6, %7 : vector<8x32xf32>
    %9 = arith.truncf %8 : vector<8x32xf32> to vector<8x32xbf16>
    %c0_6 = arith.constant 0 : index
    %c0_7 = arith.constant 0 : index
    %10 = vector.load %arg4[%c0_6, %c0_7] : memref<32x16xbf16, #tpu.memory_space<vmem>>, vector<32x16xbf16>
    %cst_8 = arith.constant dense<0.000000e+00> : vector<8x16xf32>
    %11 = tpu.matmul %9, %10, %cst_8 {dimension_numbers = #tpu.dot_dimension_numbers<[1], [0], [0], [1], [0, 0, 1, 1], [], []>} : vector<8x32xbf16>, vector<32x16xbf16>, vector<8x16xf32> -> vector<8x16xf32>
    %c0_9 = arith.constant 0 : index
    %c0_10 = arith.constant 0 : index
    %12 = vector.load %arg5[%c0_9, %c0_10] : memref<1x16xf32, #tpu.memory_space<vmem>>, vector<1x16xf32>
    %13 = vector.broadcast %12 : vector<1x16xf32> to vector<8x16xf32>
    %14 = arith.addf %11, %13 : vector<8x16xf32>
    %cst_11 = arith.constant 5.000000e-01 : f32
    %15 = vector.broadcast %cst_11 : f32 to vector<8x16xf32>
    %16 = arith.mulf %15, %14 : vector<8x16xf32>
    %17 = math.tanh %16 : vector<8x16xf32>
    %cst_12 = arith.constant 1.000000e+00 : f32
    %18 = vector.broadcast %cst_12 : f32 to vector<8x16xf32>
    %19 = arith.addf %17, %18 : vector<8x16xf32>
    %cst_13 = arith.constant 5.000000e-01 : f32
    %20 = vector.broadcast %cst_13 : f32 to vector<8x16xf32>
    %21 = arith.mulf %20, %19 : vector<8x16xf32>
    %c0_14 = arith.constant 0 : index
    %c0_15 = arith.constant 0 : index
    %22 = vector.load %arg6[%c0_14, %c0_15] : memref<8x16xf32, #tpu.memory_space<vmem>>, vector<8x16xf32>
    tpu.vector_store %arg6[%c0_14, %c0_15], %21 {strides = array<i32>} : memref<8x16xf32, #tpu.memory_space<vmem>>, vector<8x16xf32>,
    return
  }
  func.func @transform_0(%arg0: i32) -> (i32, i32) {
    %c0_i32 = arith.constant 0 : i32
    %c0_i32_0 = arith.constant 0 : i32
    return %arg0, %c0_i32 : i32, i32
  }
  func.func @transform_1(%arg0: i32) -> (i32, i32) {
    %c0_i32 = arith.constant 0 : i32
    %c0_i32_0 = arith.constant 0 : i32
    %c0_i32_1 = arith.constant 0 : i32
    return %c0_i32, %c0_i32_0 : i32, i32
  }
  func.func @transform_2(%arg0: i32) -> (i32, i32) {
    %c0_i32 = arith.constant 0 : i32
    %c0_i32_0 = arith.constant 0 : i32
    %c0_i32_1 = arith.constant 0 : i32
    return %c0_i32, %c0_i32_0 : i32, i32
  }
  func.func @transform_3(%arg0: i32) -> (i32, i32) {
    %c0_i32 = arith.constant 0 : i32
    %c0_i32_0 = arith.constant 0 : i32
    %c0_i32_1 = arith.constant 0 : i32
    return %c0_i32, %c0_i32_0 : i32, i32
  }
  func.func @transform_4(%arg0: i32) -> (i32, i32) {
    %c0_i32 = arith.constant 0 : i32
    %c0_i32_0 = arith.constant 0 : i32
    %c0_i32_1 = arith.constant 0 : i32
    return %c0_i32, %c0_i32_0 : i32, i32
  }
  func.func @transform_5(%arg0: i32) -> (i32, i32) {
    %c0_i32 = arith.constant 0 : i32
    %c0_i32_0 = arith.constant 0 : i32
    return %arg0, %c0_i32 : i32, i32
  }
}

</mosaic_0001>

<bundles_post_ra>
// kernel: tpu_custom_call.1
= control target key start
LH: loop header
LB: loop body
LE: loop exit
PB: predicated region body
PF: predicated region fallthrough
CT: control target
= control target key end

     0   :  { %s215_s0 = inlined_call_operand.vmem [shape: f32[8,16], index: 0, kind: input, shape index: {}]   ;;  %s216_s1 = inlined_call_operand.vmem [shape: bf16[16,32], index: 1, kind: input, shape index: {}]   ;;  %s217_s2 = inlined_call_operand.vmem [shape: f32[1,32], index: 2, kind: input, shape index: {}]   ;;  %s218_s3 = inlined_call_operand.vmem [shape: bf16[32,16], index: 3, kind: input, shape index: {}]   ;;  %s219_s4 = inlined_call_operand.vmem [shape: f32[1,16], index: 4, kind: input, shape index: {}]   ;;  %s220_s5 = inlined_call_operand.hbm [shape: f32[8,16], index: 5, kind: output, shape index: {}]  }
   0x1   :  { %v127_v0 = vld [vmem:[%s216_s1] sm:$0xff] }
   0x2   :  { %v22_v1 = vld [vmem:[%s215_s0] sm:$0xff] }
   0x3   :  { %v23_v2 = vpack.c.bf16 %v22_v1, %v22_v1 }
   0x4   :  { %10 = vsyncpa [#allocation3], 0  ;;  %47 = vmatpush.bf16.msra.mxu0 %v127_v0  ;;  %vm36_vm0 = vcmask 130048   ;;  %v129_v3 = vld [vmem:[%s218_s3 + $0x8] sm:$0xff]  ;;  %v128_v4 = vld [vmem:[%s218_s3] sm:$0xff]  ;;  %vm75_vm1 = vcmask 261120  }
   0x5   :  { %85 = vmatpush.bf16.msra.mxu1 %v129_v3  ;;  %v131_v5 = vld [vmem:[%s217_s2] ss:$0 sm:$0xff]  ;;  %s161_s3 = smov [#allocation2]   ;;  %s104_s30 = sshll.u32 %s220_s5, 4  ;;  %s105_s30 = int_to_ptr.hbm [resolvable:$true] %s104_s30 }
   0x6   :  { %v132_v11 = vld [vmem:[%s219_s4] ss:$0 sm:$0xff]  ;;  %s102_s28 = sshll.u32 %s161_s3, 4  ;;  %s103_s28 = int_to_ptr.vmem [resolvable:$true] %s102_s28 }
   0x7   :  { %117 = vmatmul.msk.bf16.vlgmr.msra.gmra.mxu0 %vm36_vm0, %v23_v2 }
   0x9   :  { %86 = vmatpush.bf16.msra.mxu1 %v128_v4 }
  0x84   :  { %v49_v6 = vpop.f32.mrf.mxu0 }
  0x85   :  { %v50_v7 = vadd.f32 %v131_v5, %v49_v6 }
  0x87   :  { %v53_v8 = vmax.f32 %v50_v7, 0.0 }
  0x89   :  { %v54_v9 = vpack.c.bf16 %v53_v8, %v53_v8 }
  0x8b   :  { %126 = vmatmul.msk.bf16.vlgmr.msra.gmra.mxu1 %vm75_vm1, %v54_v9 }
  0x8c   :  { %v51_v10 = vpop.f32.mrf.mxu0 }
 0x108   :  { %v88_v12 = vpop.f32.mrf.mxu1 }
 0x109   :  { %v89_v13 = vadd.f32 %v132_v11, %v88_v12 }
 0x10b   :  { %v92_v14 = vmul.f32 0.5, %v89_v13 }
 0x10d   :  { %133 = vtanh.f32 %v92_v14 }
 0x110   :  { %v90_v15 = vpop.f32.mrf.mxu1 }
 0x113   :  { %v134_v16 = vpop.eup %133 }
 0x114   :  { %v94_v17 = vadd.f32 1.0, %v134_v16 }
 0x116   :  { %v95_v18 = vmul.f32 0.5, %v94_v17 }
 0x118   :  { %96 = vst.msk [vmem:[#allocation2] sm:$0xff] %vm36_vm0, %v95_v18 }
 0x119   :  { %107 = dma.vmem_to_hbm [thread:$0]  %s103_s28, 128, %s105_s30, [#allocation3]  }
 0x11a   :  { %159 = dma.done.wait [#allocation3], 128  }
 0x11b   :  { %160 = vsyncadd [#allocation3], 4294967168 }
 0x11c   :  { %112 = vsyncpa [#allocation3], 1 }

</bundles_post_ra>
